<compile_context>
chip_gen: v5e
topology: v5e:2x2
jax: 0.10.0
libtpu: 0.0.40
codegen_flags: <defaults>
</compile_context>

<pallas_src>
import numpy as np
import jax
import jax.numpy as jnp
from jax import lax
from jax.experimental import pallas as pl
from jax.experimental.pallas import tpu as pltpu


def _make_hexconv_kernel(taps):
    """taps: static tuple of (flat_shift, needs_mask) per hexagonal tap."""

    def kernel(x_ref, w_ref, m_ref, b_ref, o_ref):
        # x_ref: (TB*C, H*W)      flattened NCHW activations, TB batch elements
        # w_ref: (T, TB*O, TB*C)  per-tap block-diagonal weights
        # m_ref: (T, 1, H*W)      per-tap boundary + column-parity masks (0/1)
        # b_ref: (TB*O, 1)        bias tiled per batch element (f32)
        # o_ref: (TB*O, H*W)      lane-dense output block
        x = x_ref[...]
        hw = x.shape[-1]
        acc = jnp.zeros(o_ref.shape, jnp.float32)
        for t, (shift, needs_mask) in enumerate(taps):
            xt = x if shift == 0 else pltpu.roll(x, (-shift) % hw, 1)
            if needs_mask:
                xt = xt * m_ref[t]
            acc = acc + jnp.dot(w_ref[t], xt,
                                preferred_element_type=jnp.float32)
        o_ref[...] = (acc + b_ref[...]).astype(o_ref.dtype)

    return kernel


def _pick_batch_block(n, c, o, hw, itemsize):
    """Largest divisor of n keeping block sublanes 8-aligned and VMEM small."""
    budget = 8 << 20  # bytes for the x/out blocks of one grid step
    for cand in range(min(n, 16), 0, -1):
        if n % cand:
            continue
        if (cand * c) % 8 or (cand * o) % 8:
            continue
        if cand * (c + o) * hw * itemsize > budget:
            continue
        return cand
    return n  # full-batch block is always BlockSpec-legal (equals full dims)


def hex_conv2d(x_nchw, k0, k1, bias):
    """Forward pass of hexagdly.conv2d(in, out, size=1, stride=1). NCHW in/out."""
    N, C, H, W = x_nchw.shape
    O = k0.shape[0]
    HW = H * W
    TB = _pick_batch_block(N, C, O, HW, x_nchw.dtype.itemsize)

    # Hex stencil as (row shift, col shift, output-column parity, weight slice).
    # parity None -> tap applies to every output column; 0/1 -> even/odd
    # (0-based) output columns only (hexagonal alignment of the side columns).
    tap_defs = [
        (-1, 0, None, k0[:, :, 0, 0]),
        (0, 0, None, k0[:, :, 1, 0]),
        (1, 0, None, k0[:, :, 2, 0]),
        (-1, -1, 0, k1[:, :, 0, 0]), (0, -1, 1, k1[:, :, 0, 0]),
        (0, -1, 0, k1[:, :, 1, 0]), (1, -1, 1, k1[:, :, 1, 0]),
        (-1, 1, 0, k1[:, :, 0, 1]), (0, 1, 1, k1[:, :, 0, 1]),
        (0, 1, 0, k1[:, :, 1, 1]), (1, 1, 1, k1[:, :, 1, 1]),
    ]
    T = len(tap_defs)

    # Static per-tap masks (numpy constants): image-boundary validity folded
    # with column parity, over the flat spatial index f = r*W + c.
    ff = np.arange(HW)
    rr, cc = ff // W, ff % W
    masks_np = np.zeros((T, 1, HW), dtype=np.float32)
    taps_static = []
    for t, (dr, dc, par, _) in enumerate(tap_defs):
        ok = (rr + dr >= 0) & (rr + dr < H) & (cc + dc >= 0) & (cc + dc < W)
        if par is not None:
            ok = ok & ((cc % 2) == par)
        masks_np[t, 0, :] = ok
        taps_static.append(
            (dr * W + dc, not (dr == 0 and dc == 0 and par is None)))
    masks = jnp.asarray(masks_np, dtype=x_nchw.dtype)

    # Block-diagonal per-tap weights: one (TB*O, TB*C) dot covers TB batch
    # elements at once (MXU K/M padding makes the extra zero blocks free).
    eye = jnp.eye(TB, dtype=jnp.float32)
    wstack = jnp.stack([jnp.kron(eye, w.astype(jnp.float32))
                        for (_, _, _, w) in tap_defs])  # (T, TB*O, TB*C)
    b_col = jnp.tile(bias.astype(jnp.float32), TB).reshape(TB * O, 1)

    x_flat = x_nchw.reshape(N * C, HW)  # free: contiguous NCHW reshape

    out_flat = pl.pallas_call(
        _make_hexconv_kernel(tuple(taps_static)),
        out_shape=jax.ShapeDtypeStruct((N * O, HW), x_nchw.dtype),
        grid=(N // TB,),
        in_specs=[
            pl.BlockSpec((TB * C, HW), lambda b: (b, 0)),
            pl.BlockSpec((T, TB * O, TB * C), lambda b: (0, 0, 0)),
            pl.BlockSpec((T, 1, HW), lambda b: (0, 0, 0)),
            pl.BlockSpec((TB * O, 1), lambda b: (0, 0)),
        ],
        out_specs=pl.BlockSpec((TB * O, HW), lambda b: (b, 0)),
        compiler_params=pltpu.CompilerParams(
            dimension_semantics=("parallel",)),
    )(x_flat, wstack, masks, b_col)

    return out_flat.reshape(N, O, H, W)  # free: contiguous reshape back


def hex_conv2d_ref(x, k0, k1, bias):
    """Pure-JAX replica of conv_with_single_stride (size=1) for verification."""
    N, C, H, W = x.shape
    mod2 = W % 2
    dn = ('NCHW', 'OIHW', 'NCHW')
    even_all = lax.conv_general_dilated(
        jnp.pad(x, ((0, 0), (0, 0), (1, 1), (0, 0))), k0,
        window_strides=(1, 1), padding='VALID',
        dimension_numbers=dn) + bias[None, :, None, None]
    okoc = lax.conv_general_dilated(
        jnp.pad(x, ((0, 0), (0, 0), (1, 0), (1, mod2))), k1,
        window_strides=(1, 2), padding='VALID', rhs_dilation=(1, 2),
        dimension_numbers=dn)
    okec = lax.conv_general_dilated(
        jnp.pad(x, ((0, 0), (0, 0), (0, 1), (0, 1 - mod2))), k1,
        window_strides=(1, 2), padding='VALID', rhs_dilation=(1, 2),
        dimension_numbers=dn)
    cat = jnp.concatenate([okoc, okec], axis=3)
    n_odd, n_even = okoc.shape[3], okec.shape[3]
    if n_odd == n_even:
        order = [i + s * n_even for i in range(n_even) for s in (0, 1)]
    else:
        order = [i + s * n_odd for i in range(n_even) for s in (0, 1)]
        order.append(n_even)
    return even_all + cat[:, :, :, jnp.array(order)]


if __name__ == "__main__":
    N, C, O, H, W = 2, 4, 8, 16, 16  # in_channels=4, out_channels=8, size=1, stride=1
    key = jax.random.PRNGKey(0)
    kx, kk0, kk1 = jax.random.split(key, 3)

    x = jax.random.normal(kx, (N, C, H, W), jnp.float32)
    # deterministic kaiming-normal-style init (matching module parameter shapes)
    k0 = jax.random.normal(kk0, (O, C, 3, 1), jnp.float32) * (2.0 / (C * 3)) ** 0.5
    k1 = jax.random.normal(kk1, (O, C, 2, 2), jnp.float32) * (2.0 / (C * 4)) ** 0.5
    bias = jnp.full((O,), 0.01, jnp.float32)

    out = jax.block_until_ready(hex_conv2d(x, k0, k1, bias))
    ref = jax.block_until_ready(hex_conv2d_ref(x, k0, k1, bias))

    assert out.shape == (N, O, H, W), out.shape
    assert jnp.allclose(out, ref, rtol=2e-4, atol=2e-4), float(
        jnp.max(jnp.abs(out - ref)))
    print("KERNEL_OK")
</pallas_src>

<mosaic_0001>
module attributes {stable_mosaic.version = 11 : i64} {
  func.func @kernel(%arg0: i32, %arg1: memref<8x256xf32, #tpu.memory_space<vmem>>, %arg2: memref<11x16x8xf32, #tpu.memory_space<vmem>>, %arg3: memref<11x1x256xf32, #tpu.memory_space<vmem>>, %arg4: memref<16x1xf32, #tpu.memory_space<vmem>>, %arg5: memref<16x256xf32, #tpu.memory_space<vmem>>) attributes {dimension_semantics = [#tpu.dimension_semantics<parallel>], iteration_bounds = array<i64: 1>, scalar_prefetch = 0 : i64, scratch_operands = 0 : i64, tpu.core_type = #tpu.core_type<tc>, window_params = [{transform_indices = @transform_0, window_bounds = array<i64: 8, 256>}, {pipeline_mode = #tpu.pipeline_mode<synchronous>, transform_indices = @transform_1, window_bounds = array<i64: 11, 16, 8>}, {pipeline_mode = #tpu.pipeline_mode<synchronous>, transform_indices = @transform_2, window_bounds = array<i64: 11, 1, 256>}, {pipeline_mode = #tpu.pipeline_mode<synchronous>, transform_indices = @transform_3, window_bounds = array<i64: 16, 1>}, {transform_indices = @transform_4, window_bounds = array<i64: 16, 256>}]} {
    %c0 = arith.constant 0 : index
    %c0_0 = arith.constant 0 : index
    %0 = vector.load %arg1[%c0, %c0_0] : memref<8x256xf32, #tpu.memory_space<vmem>>, vector<8x256xf32>
    %cst = arith.constant 0.000000e+00 : f32
    %1 = vector.broadcast %cst : f32 to vector<16x256xf32>
    %c16_i32 = arith.constant 16 : i32
    %2 = tpu.dynamic_rotate %0 by %c16_i32 dim 1 : vector<8x256xf32>, i32 -> vector<8x256xf32>
    %c0_1 = arith.constant 0 : index
    %c0_2 = arith.constant 0 : index
    %c0_3 = arith.constant 0 : index
    %3 = vector.load %arg3[%c0_1, %c0_2, %c0_3] : memref<11x1x256xf32, #tpu.memory_space<vmem>>, vector<1x1x256xf32>
    %4 = vector.shape_cast %3 : vector<1x1x256xf32> to vector<1x256xf32>
    %5 = vector.broadcast %4 : vector<1x256xf32> to vector<8x256xf32>
    %6 = arith.mulf %2, %5 : vector<8x256xf32>
    %c0_4 = arith.constant 0 : index
    %c0_5 = arith.constant 0 : index
    %c0_6 = arith.constant 0 : index
    %7 = vector.load %arg2[%c0_4, %c0_5, %c0_6] : memref<11x16x8xf32, #tpu.memory_space<vmem>>, vector<1x16x8xf32>
    %8 = vector.shape_cast %7 : vector<1x16x8xf32> to vector<16x8xf32>
    %cst_7 = arith.constant dense<0.000000e+00> : vector<16x256xf32>
    %9 = tpu.matmul %8, %6, %cst_7 {dimension_numbers = #tpu.dot_dimension_numbers<[1], [0], [0], [1], [0, 0, 1, 1], [], []>} : vector<16x8xf32>, vector<8x256xf32>, vector<16x256xf32> -> vector<16x256xf32>
    %10 = arith.addf %1, %9 : vector<16x256xf32>
    %c1 = arith.constant 1 : index
    %c0_8 = arith.constant 0 : index
    %c0_9 = arith.constant 0 : index
    %11 = vector.load %arg2[%c1, %c0_8, %c0_9] : memref<11x16x8xf32, #tpu.memory_space<vmem>>, vector<1x16x8xf32>
    %12 = vector.shape_cast %11 : vector<1x16x8xf32> to vector<16x8xf32>
    %cst_10 = arith.constant dense<0.000000e+00> : vector<16x256xf32>
    %13 = tpu.matmul %12, %0, %cst_10 {dimension_numbers = #tpu.dot_dimension_numbers<[1], [0], [0], [1], [0, 0, 1, 1], [], []>} : vector<16x8xf32>, vector<8x256xf32>, vector<16x256xf32> -> vector<16x256xf32>
    %14 = arith.addf %10, %13 : vector<16x256xf32>
    %c240_i32 = arith.constant 240 : i32
    %15 = tpu.dynamic_rotate %0 by %c240_i32 dim 1 : vector<8x256xf32>, i32 -> vector<8x256xf32>
    %c2 = arith.constant 2 : index
    %c0_11 = arith.constant 0 : index
    %c0_12 = arith.constant 0 : index
    %16 = vector.load %arg3[%c2, %c0_11, %c0_12] : memref<11x1x256xf32, #tpu.memory_space<vmem>>, vector<1x1x256xf32>
    %17 = vector.shape_cast %16 : vector<1x1x256xf32> to vector<1x256xf32>
    %18 = vector.broadcast %17 : vector<1x256xf32> to vector<8x256xf32>
    %19 = arith.mulf %15, %18 : vector<8x256xf32>
    %c2_13 = arith.constant 2 : index
    %c0_14 = arith.constant 0 : index
    %c0_15 = arith.constant 0 : index
    %20 = vector.load %arg2[%c2_13, %c0_14, %c0_15] : memref<11x16x8xf32, #tpu.memory_space<vmem>>, vector<1x16x8xf32>
    %21 = vector.shape_cast %20 : vector<1x16x8xf32> to vector<16x8xf32>
    %cst_16 = arith.constant dense<0.000000e+00> : vector<16x256xf32>
    %22 = tpu.matmul %21, %19, %cst_16 {dimension_numbers = #tpu.dot_dimension_numbers<[1], [0], [0], [1], [0, 0, 1, 1], [], []>} : vector<16x8xf32>, vector<8x256xf32>, vector<16x256xf32> -> vector<16x256xf32>
    %23 = arith.addf %14, %22 : vector<16x256xf32>
    %c17_i32 = arith.constant 17 : i32
    %24 = tpu.dynamic_rotate %0 by %c17_i32 dim 1 : vector<8x256xf32>, i32 -> vector<8x256xf32>
    %c3 = arith.constant 3 : index
    %c0_17 = arith.constant 0 : index
    %c0_18 = arith.constant 0 : index
    %25 = vector.load %arg3[%c3, %c0_17, %c0_18] : memref<11x1x256xf32, #tpu.memory_space<vmem>>, vector<1x1x256xf32>
    %26 = vector.shape_cast %25 : vector<1x1x256xf32> to vector<1x256xf32>
    %27 = vector.broadcast %26 : vector<1x256xf32> to vector<8x256xf32>
    %28 = arith.mulf %24, %27 : vector<8x256xf32>
    %c3_19 = arith.constant 3 : index
    %c0_20 = arith.constant 0 : index
    %c0_21 = arith.constant 0 : index
    %29 = vector.load %arg2[%c3_19, %c0_20, %c0_21] : memref<11x16x8xf32, #tpu.memory_space<vmem>>, vector<1x16x8xf32>
    %30 = vector.shape_cast %29 : vector<1x16x8xf32> to vector<16x8xf32>
    %cst_22 = arith.constant dense<0.000000e+00> : vector<16x256xf32>
    %31 = tpu.matmul %30, %28, %cst_22 {dimension_numbers = #tpu.dot_dimension_numbers<[1], [0], [0], [1], [0, 0, 1, 1], [], []>} : vector<16x8xf32>, vector<8x256xf32>, vector<16x256xf32> -> vector<16x256xf32>
    %32 = arith.addf %23, %31 : vector<16x256xf32>
    %c1_i32 = arith.constant 1 : i32
    %33 = tpu.dynamic_rotate %0 by %c1_i32 dim 1 : vector<8x256xf32>, i32 -> vector<8x256xf32>
    %c4 = arith.constant 4 : index
    %c0_23 = arith.constant 0 : index
    %c0_24 = arith.constant 0 : index
    %34 = vector.load %arg3[%c4, %c0_23, %c0_24] : memref<11x1x256xf32, #tpu.memory_space<vmem>>, vector<1x1x256xf32>
    %35 = vector.shape_cast %34 : vector<1x1x256xf32> to vector<1x256xf32>
    %36 = vector.broadcast %35 : vector<1x256xf32> to vector<8x256xf32>
    %37 = arith.mulf %33, %36 : vector<8x256xf32>
    %c4_25 = arith.constant 4 : index
    %c0_26 = arith.constant 0 : index
    %c0_27 = arith.constant 0 : index
    %38 = vector.load %arg2[%c4_25, %c0_26, %c0_27] : memref<11x16x8xf32, #tpu.memory_space<vmem>>, vector<1x16x8xf32>
    %39 = vector.shape_cast %38 : vector<1x16x8xf32> to vector<16x8xf32>
    %cst_28 = arith.constant dense<0.000000e+00> : vector<16x256xf32>
    %40 = tpu.matmul %39, %37, %cst_28 {dimension_numbers = #tpu.dot_dimension_numbers<[1], [0], [0], [1], [0, 0, 1, 1], [], []>} : vector<16x8xf32>, vector<8x256xf32>, vector<16x256xf32> -> vector<16x256xf32>
    %41 = arith.addf %32, %40 : vector<16x256xf32>
    %c1_i32_29 = arith.constant 1 : i32
    %42 = tpu.dynamic_rotate %0 by %c1_i32_29 dim 1 : vector<8x256xf32>, i32 -> vector<8x256xf32>
    %c5 = arith.constant 5 : index
    %c0_30 = arith.constant 0 : index
    %c0_31 = arith.constant 0 : index
    %43 = vector.load %arg3[%c5, %c0_30, %c0_31] : memref<11x1x256xf32, #tpu.memory_space<vmem>>, vector<1x1x256xf32>
    %44 = vector.shape_cast %43 : vector<1x1x256xf32> to vector<1x256xf32>
    %45 = vector.broadcast %44 : vector<1x256xf32> to vector<8x256xf32>
    %46 = arith.mulf %42, %45 : vector<8x256xf32>
    %c5_32 = arith.constant 5 : index
    %c0_33 = arith.constant 0 : index
    %c0_34 = arith.constant 0 : index
    %47 = vector.load %arg2[%c5_32, %c0_33, %c0_34] : memref<11x16x8xf32, #tpu.memory_space<vmem>>, vector<1x16x8xf32>
    %48 = vector.shape_cast %47 : vector<1x16x8xf32> to vector<16x8xf32>
    %cst_35 = arith.constant dense<0.000000e+00> : vector<16x256xf32>
    %49 = tpu.matmul %48, %46, %cst_35 {dimension_numbers = #tpu.dot_dimension_numbers<[1], [0], [0], [1], [0, 0, 1, 1], [], []>} : vector<16x8xf32>, vector<8x256xf32>, vector<16x256xf32> -> vector<16x256xf32>
    %50 = arith.addf %41, %49 : vector<16x256xf32>
    %c241_i32 = arith.constant 241 : i32
    %51 = tpu.dynamic_rotate %0 by %c241_i32 dim 1 : vector<8x256xf32>, i32 -> vector<8x256xf32>
    %c6 = arith.constant 6 : index
    %c0_36 = arith.constant 0 : index
    %c0_37 = arith.constant 0 : index
    %52 = vector.load %arg3[%c6, %c0_36, %c0_37] : memref<11x1x256xf32, #tpu.memory_space<vmem>>, vector<1x1x256xf32>
    %53 = vector.shape_cast %52 : vector<1x1x256xf32> to vector<1x256xf32>
    %54 = vector.broadcast %53 : vector<1x256xf32> to vector<8x256xf32>
    %55 = arith.mulf %51, %54 : vector<8x256xf32>
    %c6_38 = arith.constant 6 : index
    %c0_39 = arith.constant 0 : index
    %c0_40 = arith.constant 0 : index
    %56 = vector.load %arg2[%c6_38, %c0_39, %c0_40] : memref<11x16x8xf32, #tpu.memory_space<vmem>>, vector<1x16x8xf32>
    %57 = vector.shape_cast %56 : vector<1x16x8xf32> to vector<16x8xf32>
    %cst_41 = arith.constant dense<0.000000e+00> : vector<16x256xf32>
    %58 = tpu.matmul %57, %55, %cst_41 {dimension_numbers = #tpu.dot_dimension_numbers<[1], [0], [0], [1], [0, 0, 1, 1], [], []>} : vector<16x8xf32>, vector<8x256xf32>, vector<16x256xf32> -> vector<16x256xf32>
    %59 = arith.addf %50, %58 : vector<16x256xf32>
    %c15_i32 = arith.constant 15 : i32
    %60 = tpu.dynamic_rotate %0 by %c15_i32 dim 1 : vector<8x256xf32>, i32 -> vector<8x256xf32>
    %c7 = arith.constant 7 : index
    %c0_42 = arith.constant 0 : index
    %c0_43 = arith.constant 0 : index
    %61 = vector.load %arg3[%c7, %c0_42, %c0_43] : memref<11x1x256xf32, #tpu.memory_space<vmem>>, vector<1x1x256xf32>
    %62 = vector.shape_cast %61 : vector<1x1x256xf32> to vector<1x256xf32>
    %63 = vector.broadcast %62 : vector<1x256xf32> to vector<8x256xf32>
    %64 = arith.mulf %60, %63 : vector<8x256xf32>
    %c7_44 = arith.constant 7 : index
    %c0_45 = arith.constant 0 : index
    %c0_46 = arith.constant 0 : index
    %65 = vector.load %arg2[%c7_44, %c0_45, %c0_46] : memref<11x16x8xf32, #tpu.memory_space<vmem>>, vector<1x16x8xf32>
    %66 = vector.shape_cast %65 : vector<1x16x8xf32> to vector<16x8xf32>
    %cst_47 = arith.constant dense<0.000000e+00> : vector<16x256xf32>
    %67 = tpu.matmul %66, %64, %cst_47 {dimension_numbers = #tpu.dot_dimension_numbers<[1], [0], [0], [1], [0, 0, 1, 1], [], []>} : vector<16x8xf32>, vector<8x256xf32>, vector<16x256xf32> -> vector<16x256xf32>
    %68 = arith.addf %59, %67 : vector<16x256xf32>
    %c255_i32 = arith.constant 255 : i32
    %69 = tpu.dynamic_rotate %0 by %c255_i32 dim 1 : vector<8x256xf32>, i32 -> vector<8x256xf32>
    %c8 = arith.constant 8 : index
    %c0_48 = arith.constant 0 : index
    %c0_49 = arith.constant 0 : index
    %70 = vector.load %arg3[%c8, %c0_48, %c0_49] : memref<11x1x256xf32, #tpu.memory_space<vmem>>, vector<1x1x256xf32>
    %71 = vector.shape_cast %70 : vector<1x1x256xf32> to vector<1x256xf32>
    %72 = vector.broadcast %71 : vector<1x256xf32> to vector<8x256xf32>
    %73 = arith.mulf %69, %72 : vector<8x256xf32>
    %c8_50 = arith.constant 8 : index
    %c0_51 = arith.constant 0 : index
    %c0_52 = arith.constant 0 : index
    %74 = vector.load %arg2[%c8_50, %c0_51, %c0_52] : memref<11x16x8xf32, #tpu.memory_space<vmem>>, vector<1x16x8xf32>
    %75 = vector.shape_cast %74 : vector<1x16x8xf32> to vector<16x8xf32>
    %cst_53 = arith.constant dense<0.000000e+00> : vector<16x256xf32>
    %76 = tpu.matmul %75, %73, %cst_53 {dimension_numbers = #tpu.dot_dimension_numbers<[1], [0], [0], [1], [0, 0, 1, 1], [], []>} : vector<16x8xf32>, vector<8x256xf32>, vector<16x256xf32> -> vector<16x256xf32>
    %77 = arith.addf %68, %76 : vector<16x256xf32>
    %c255_i32_54 = arith.constant 255 : i32
    %78 = tpu.dynamic_rotate %0 by %c255_i32_54 dim 1 : vector<8x256xf32>, i32 -> vector<8x256xf32>
    %c9 = arith.constant 9 : index
    %c0_55 = arith.constant 0 : index
    %c0_56 = arith.constant 0 : index
    %79 = vector.load %arg3[%c9, %c0_55, %c0_56] : memref<11x1x256xf32, #tpu.memory_space<vmem>>, vector<1x1x256xf32>
    %80 = vector.shape_cast %79 : vector<1x1x256xf32> to vector<1x256xf32>
    %81 = vector.broadcast %80 : vector<1x256xf32> to vector<8x256xf32>
    %82 = arith.mulf %78, %81 : vector<8x256xf32>
    %c9_57 = arith.constant 9 : index
    %c0_58 = arith.constant 0 : index
    %c0_59 = arith.constant 0 : index
    %83 = vector.load %arg2[%c9_57, %c0_58, %c0_59] : memref<11x16x8xf32, #tpu.memory_space<vmem>>, vector<1x16x8xf32>
    %84 = vector.shape_cast %83 : vector<1x16x8xf32> to vector<16x8xf32>
    %cst_60 = arith.constant dense<0.000000e+00> : vector<16x256xf32>
    %85 = tpu.matmul %84, %82, %cst_60 {dimension_numbers = #tpu.dot_dimension_numbers<[1], [0], [0], [1], [0, 0, 1, 1], [], []>} : vector<16x8xf32>, vector<8x256xf32>, vector<16x256xf32> -> vector<16x256xf32>
    %86 = arith.addf %77, %85 : vector<16x256xf32>
    %c239_i32 = arith.constant 239 : i32
    %87 = tpu.dynamic_rotate %0 by %c239_i32 dim 1 : vector<8x256xf32>, i32 -> vector<8x256xf32>
    %c10 = arith.constant 10 : index
    %c0_61 = arith.constant 0 : index
    %c0_62 = arith.constant 0 : index
    %88 = vector.load %arg3[%c10, %c0_61, %c0_62] : memref<11x1x256xf32, #tpu.memory_space<vmem>>, vector<1x1x256xf32>
    %89 = vector.shape_cast %88 : vector<1x1x256xf32> to vector<1x256xf32>
    %90 = vector.broadcast %89 : vector<1x256xf32> to vector<8x256xf32>
    %91 = arith.mulf %87, %90 : vector<8x256xf32>
    %c10_63 = arith.constant 10 : index
    %c0_64 = arith.constant 0 : index
    %c0_65 = arith.constant 0 : index
    %92 = vector.load %arg2[%c10_63, %c0_64, %c0_65] : memref<11x16x8xf32, #tpu.memory_space<vmem>>, vector<1x16x8xf32>
    %93 = vector.shape_cast %92 : vector<1x16x8xf32> to vector<16x8xf32>
    %cst_66 = arith.constant dense<0.000000e+00> : vector<16x256xf32>
    %94 = tpu.matmul %93, %91, %cst_66 {dimension_numbers = #tpu.dot_dimension_numbers<[1], [0], [0], [1], [0, 0, 1, 1], [], []>} : vector<16x8xf32>, vector<8x256xf32>, vector<16x256xf32> -> vector<16x256xf32>
    %95 = arith.addf %86, %94 : vector<16x256xf32>
    %c0_67 = arith.constant 0 : index
    %c0_68 = arith.constant 0 : index
    %96 = vector.load %arg4[%c0_67, %c0_68] : memref<16x1xf32, #tpu.memory_space<vmem>>, vector<16x1xf32>
    %97 = vector.broadcast %96 : vector<16x1xf32> to vector<16x256xf32>
    %98 = arith.addf %95, %97 : vector<16x256xf32>
    %c0_69 = arith.constant 0 : index
    %c0_70 = arith.constant 0 : index
    %99 = vector.load %arg5[%c0_69, %c0_70] : memref<16x256xf32, #tpu.memory_space<vmem>>, vector<16x256xf32>
    tpu.vector_store %arg5[%c0_69, %c0_70], %98 {strides = array<i32>} : memref<16x256xf32, #tpu.memory_space<vmem>>, vector<16x256xf32>,
    return
  }
  func.func @transform_0(%arg0: i32) -> (i32, i32) {
    %c0_i32 = arith.constant 0 : i32
    %c0_i32_0 = arith.constant 0 : i32
    return %arg0, %c0_i32 : i32, i32
  }
  func.func @transform_1(%arg0: i32) -> (i32, i32, i32) {
    %c0_i32 = arith.constant 0 : i32
    %c0_i32_0 = arith.constant 0 : i32
    %c0_i32_1 = arith.constant 0 : i32
    %c0_i32_2 = arith.constant 0 : i32
    return %c0_i32, %c0_i32_0, %c0_i32_1 : i32, i32, i32
  }
  func.func @transform_2(%arg0: i32) -> (i32, i32, i32) {
    %c0_i32 = arith.constant 0 : i32
    %c0_i32_0 = arith.constant 0 : i32
    %c0_i32_1 = arith.constant 0 : i32
    %c0_i32_2 = arith.constant 0 : i32
    return %c0_i32, %c0_i32_0, %c0_i32_1 : i32, i32, i32
  }
  func.func @transform_3(%arg0: i32) -> (i32, i32) {
    %c0_i32 = arith.constant 0 : i32
    %c0_i32_0 = arith.constant 0 : i32
    %c0_i32_1 = arith.constant 0 : i32
    return %c0_i32, %c0_i32_0 : i32, i32
  }
  func.func @transform_4(%arg0: i32) -> (i32, i32) {
    %c0_i32 = arith.constant 0 : i32
    %c0_i32_0 = arith.constant 0 : i32
    return %arg0, %c0_i32 : i32, i32
  }
}

</mosaic_0001>

<bundles_post_ra>
// kernel: tpu_custom_call.1
= control target key start
LH: loop header
LB: loop body
LE: loop exit
PB: predicated region body
PF: predicated region fallthrough
CT: control target
= control target key end

     0   :  { %s1165_s0 = inlined_call_operand.vmem [shape: f32[8,256], index: 0, kind: input, shape index: {}]   ;;  %s1166_s1 = inlined_call_operand.vmem [shape: f32[11,16,8], index: 1, kind: input, shape index: {}]   ;;  %s1167_s2 = inlined_call_operand.vmem [shape: f32[11,1,256], index: 2, kind: input, shape index: {}]   ;;  %s1168_s3 = inlined_call_operand.vmem [shape: f32[16,1], index: 3, kind: input, shape index: {}]   ;;  %s1169_s4 = inlined_call_operand.hbm [shape: f32[16,256], index: 4, kind: output, shape index: {}]  }
   0x1   :  { %v18_v0 = vld [vmem:[%s1165_s0] sm:$0xff] }
   0x2   :  { %9 = vsyncpa [#allocation3], 0  ;;  %s961_s17 = smov 112   ;;  %s962_s18 = smov 16   ;;  %v19_v1 = vld [vmem:[%s1165_s0 + $0x8] sm:$0xff]  ;;  %919 = vmatpush.msra.mxu2 %v18_v0  ;;  %64 = vmatpush.msra.mxu0 %v18_v0  ;;  %v847_v2 = vld [vmem:[%s1166_s1 + $0x18] sm:$0xff]  ;;  %v24_v5 = vlaneseq }
   0x3   :  { %147 = vrot.lane.b32.xlu1 %v18_v0, %s961_s17  ;;  %20 = vrot.lane.b32.xlu0 %v18_v0, %s962_s18  ;;  %s963_s21 = smov 17   ;;  %s964_s22 = smov 1   ;;  %vm42_vm0 = vcmask 64512   ;;  %v846_v3 = vld [vmem:[%s1166_s1 + $0x10] sm:$0xff]  ;;  %v29_v9 = vld [vmem:[%s1167_s2] sm:$0x3] }
   0x4   :  { %222 = vrot.lane.b32.xlu2 %v18_v0, %s963_s21  ;;  %920 = vmatpush.msra.mxu3 %v19_v1  ;;  %s965_s23 = smov 113   ;;  %s966_s24 = smov 15   ;;  %v1015_v8 = vand.u32 127, %v24_v5  ;;  %v856_v10 = vld [vmem:[%s1167_s2 + $0x4] sm:$0x3]  ;;  %v31_v13 = vperm.slane %v29_v9, 0 }
   0x5   :  { %87 = vmatpush.msra.mxu1 %v19_v1  ;;  %s967_s0 = smov 127   ;;  %s968_s25 = smov 111   ;;  %849 = vmatmul.msk.f32.vlgmr.msra.gmra.mxu2 %vm42_vm0, %v847_v2  ;;  %v863_v11 = vld [vmem:[%s1167_s2 + $0x6] sm:$0x3]  ;;  %v32_v14 = vperm.slane %v29_v9, 1  ;;  %v157_v15 = vperm.slane %v856_v10, 0 }
   0x6   :  { %851 = vmatmul.msk.f32.vlgmr.msra.gmra.mxu3 %vm42_vm0, %v847_v2  ;;  %848 = vmatmul.msk.f32.vlgmr.msra.gmra.mxu0 %vm42_vm0, %v846_v3  ;;  %vm226_vm1 = vcmp.lt.s32.totalorder %v1015_v8, 17  ;;  %vm151_vm2 = vcmp.lt.s32.totalorder %v1015_v8, 112  ;;  %vm26_vm3 = vcmp.lt.s32.totalorder %v1015_v8, 16  ;;  %v158_v16 = vperm.slane %v856_v10, 1  ;;  %v37_v33 = vld [vmem:[%s1166_s1] sm:$0xff]  ;;  %v38_v50 = vld [vmem:[%s1166_s1 + $0x8] sm:$0xff] }
   0x7   :  { %850 = vmatmul.msk.f32.vlgmr.msra.gmra.mxu1 %vm42_vm0, %v846_v3  ;;  %v232_v17 = vperm.slane %v863_v11, 0  ;;  %v233_v18 = vperm.slane %v863_v11, 1  ;;  %v870_v34 = vld [vmem:[%s1167_s2 + $0x8] sm:$0x3]  ;;  %v877_v35 = vld [vmem:[%s1167_s2 + $0xa] sm:$0x3] }
   0x8   :  { %v857_v37 = vld [vmem:[%s1166_s1 + $0x20] sm:$0xff]  ;;  %vm301_vm4 = vcmp.lt.s32.totalorder %v1015_v8, 1  ;;  %v307_v38 = vperm.slane %v870_v34, 0  ;;  %v308_v39 = vperm.slane %v870_v34, 1  ;;  %v375_v40 = vperm.slane %v877_v35, 0  ;;  %v858_v53 = vld [vmem:[%s1166_s1 + $0x28] sm:$0xff] }
   0x9   :  { %v376_v41 = vperm.slane %v877_v35, 1  ;;  %v884_v51 = vld [vmem:[%s1167_s2 + $0xc] sm:$0x3]  ;;  %v891_v52 = vld [vmem:[%s1167_s2 + $0xe] sm:$0x3]  ;;  %vm444_vm5 = vcmp.lt.s32.totalorder %v1015_v8, 113 }
   0xa   :  { %v450_v54 = vperm.slane %v884_v51, 0  ;;  %v451_v55 = vperm.slane %v884_v51, 1  ;;  %vm519_vm6 = vcmp.lt.s32.totalorder %v1015_v8, 15  ;;  %v525_v57 = vperm.slane %v891_v52, 0  ;;  %v864_v3 = vld [vmem:[%s1166_s1 + $0x30] sm:$0xff]  ;;  %v879_v34 = vld [vmem:[%s1166_s1 + $0x58] sm:$0xff] }
   0xb   :  { %149 = vrot.lane.b32.xlu1 %v19_v1, %s961_s17  ;;  %22 = vrot.lane.b32.xlu0 %v19_v1, %s962_s18  ;;  %v526_v58 = vperm.slane %v891_v52, 1  ;;  %vm594_vm7 = vcmp.lt.s32.totalorder %v1015_v8, 127  ;;  %vm737_vm8 = vcmp.lt.s32.totalorder %v1015_v8, 111  ;;  %v886_v35 = vld [vmem:[%s1166_s1 + $0x68] sm:$0xff]  ;;  %s834_s16 = sshll.u32 %s1169_s4, 4  ;;  %s971_s17 = smov 256   ;;  %s835_s16 = int_to_ptr.hbm [resolvable:$true] %s834_s16 }
   0xc   :  { %224 = vrot.lane.b32.xlu2 %v19_v1, %s963_s21 }
  0x13   :  { %299 = vrot.lane.b32.xlu1 %v19_v1, %s964_s22  ;;  %297 = vrot.lane.b32.xlu0 %v18_v0, %s964_s22 }
  0x14   :  { %440 = vrot.lane.b32.xlu2 %v18_v0, %s965_s23 }
  0x1b   :  { %442 = vrot.lane.b32.xlu0 %v19_v1, %s965_s23  ;;  %515 = vrot.lane.b32.xlu1 %v18_v0, %s966_s24 }
  0x1c   :  { %517 = vrot.lane.b32.xlu2 %v19_v1, %s966_s24 }
  0x23   :  { %592 = vrot.lane.b32.xlu1 %v19_v1, %s967_s0  ;;  %590 = vrot.lane.b32.xlu0 %v18_v0, %s967_s0 }
  0x24   :  { %733 = vrot.lane.b32.xlu2 %v18_v0, %s968_s25 }
  0x2b   :  { %735 = vrot.lane.b32.xlu0 %v19_v1, %s968_s25 }
  0x5e   :  { %v223_v4 = vpop.permute.xlu2 %222 }
  0x66   :  { %v225_v12 = vpop.permute.xlu2 %224 }
  0x67   :  { %v227_v19 = vsel %vm226_vm1, %v223_v4, %v225_v12  ;;  %v228_v20 = vsel %vm226_vm1, %v225_v12, %v223_v4 }
  0x68   :  { %v236_v31 = vmul.f32 %v232_v17, %v228_v20  ;;  %v237_v32 = vmul.f32 %v233_v18, %v227_v19  ;;  %v865_v17 = vld [vmem:[%s1166_s1 + $0x38] sm:$0xff]  ;;  %v905_v18 = vld [vmem:[%s1167_s2 + $0x12] sm:$0x3]  ;;  %v872_v19 = vld [vmem:[%s1166_s1 + $0x48] sm:$0xff] }
  0x69   :  { %v912_v20 = vld [vmem:[%s1167_s2 + $0x14] sm:$0x3] }
  0x6e   :  { %v441_v36 = vpop.permute.xlu2 %440 }
  0x75   :  { %v148_v6 = vpop.permute.xlu1 %147  ;;  %v21_v7 = vpop.permute.xlu0 %20 }
  0x76   :  { %v518_v56 = vpop.permute.xlu2 %517 }
  0x7d   :  { %v150_v21 = vpop.permute.xlu1 %149  ;;  %v23_v22 = vpop.permute.xlu0 %22 }
  0x7e   :  { %v152_v23 = vsel %vm151_vm2, %v148_v6, %v150_v21  ;;  %v153_v24 = vsel %vm151_vm2, %v150_v21, %v148_v6  ;;  %v27_v25 = vsel %vm26_vm3, %v21_v7, %v23_v22  ;;  %v28_v26 = vsel %vm26_vm3, %v23_v22, %v21_v7  ;;  %v898_v6 = vld [vmem:[%s1167_s2 + $0x10] sm:$0x3]  ;;  %v871_v7 = vld [vmem:[%s1166_s1 + $0x40] sm:$0xff] }
  0x7f   :  { %v35_v27 = vmul.f32 %v31_v13, %v28_v26  ;;  %v36_v28 = vmul.f32 %v32_v14, %v27_v25  ;;  %v161_v29 = vmul.f32 %v157_v15, %v152_v23  ;;  %v162_v30 = vmul.f32 %v158_v16, %v153_v24  ;;  %v734_v23 = vpop.permute.xlu2 %733 }
  0x80   :  { %v600_v9 = vperm.slane %v898_v6, 0  ;;  %v601_v10 = vperm.slane %v898_v6, 1  ;;  %v668_v21 = vperm.slane %v905_v18, 0  ;;  %v669_v22 = vperm.slane %v905_v18, 1 }
  0x81   :  { %116 = vmatpush.msrb.mxu2 %v35_v27  ;;  %139 = vmatpush.msrb.mxu3 %v36_v28  ;;  %v743_v25 = vperm.slane %v912_v20, 0  ;;  %v744_v26 = vperm.slane %v912_v20, 1 }
  0x82   :  { %187 = vmatpush.msrb.mxu0 %v161_v29  ;;  %210 = vmatpush.msrb.mxu1 %v162_v30  ;;  %v878_v29 = vld [vmem:[%s1166_s1 + $0x50] sm:$0xff] }
  0x83   :  { %852 = vmatmul.msk.f32.vlgmr.msrb.gmra.mxu2 %vm42_vm0, %v37_v33  ;;  %854 = vmatmul.msk.f32.vlgmr.msrb.gmra.mxu3 %vm42_vm0, %v37_v33 }
  0x84   :  { %262 = vmatpush.msra.mxu2 %v236_v31  ;;  %285 = vmatpush.msra.mxu3 %v237_v32  ;;  %v885_v32 = vld [vmem:[%s1166_s1 + $0x60] sm:$0xff] }
  0x85   :  { %859 = vmatmul.msk.f32.vlgmr.msrb.gmra.mxu0 %vm42_vm0, %v857_v37  ;;  %861 = vmatmul.msk.f32.vlgmr.msrb.gmra.mxu1 %vm42_vm0, %v857_v37  ;;  %v300_v42 = vpop.permute.xlu1 %299  ;;  %v298_v43 = vpop.permute.xlu0 %297  ;;  %v809_v37 = vld [vmem:[%s1168_s3 + $0x8] sm:$0xff] }
  0x86   :  { %v302_v44 = vsel %vm301_vm4, %v298_v43, %v300_v42  ;;  %v303_v45 = vsel %vm301_vm4, %v300_v42, %v298_v43  ;;  %v900_v42 = vld [vmem:[%s1166_s1 + $0x88] sm:$0xff]  ;;  %v906_v43 = vld [vmem:[%s1166_s1 + $0x90] sm:$0xff] }
  0x87   :  { %v311_v46 = vmul.f32 %v307_v38, %v303_v45  ;;  %v312_v47 = vmul.f32 %v308_v39, %v302_v44  ;;  %v379_v48 = vmul.f32 %v375_v40, %v303_v45  ;;  %v380_v49 = vmul.f32 %v376_v41, %v302_v44  ;;  %v892_v39 = vld [vmem:[%s1166_s1 + $0x70] sm:$0xff]  ;;  %v899_v40 = vld [vmem:[%s1166_s1 + $0x80] sm:$0xff]  ;;  %v893_v41 = vld [vmem:[%s1166_s1 + $0x78] sm:$0xff] }
  0x88   :  { %v969_v38 = vmov 0   ;;  %v913_v44 = vld [vmem:[%s1166_s1 + $0xa0] sm:$0xff]  ;;  %v907_v45 = vld [vmem:[%s1166_s1 + $0x98] sm:$0xff] }
  0x89   :  { %337 = vmatpush.msra.mxu0 %v311_v46  ;;  %360 = vmatpush.msra.mxu1 %v312_v47  ;;  %v914_v46 = vld [vmem:[%s1166_s1 + $0xa8] sm:$0xff]  ;;  %v66_v47 = vpop.f32.mrf.mxu0  ;;  %s970_s1 = smov [#allocation2]  }
  0x8a   :  { %405 = vmatpush.msrb.mxu2 %v379_v48  ;;  %428 = vmatpush.msrb.mxu3 %v380_v49  ;;  %v89_v48 = vpop.f32.mrf.mxu1  ;;  %v69_v49 = vpop.f32.mrf.mxu2  ;;  %s832_s14 = sshll.u32 %s970_s1, 4  ;;  %s833_s14 = int_to_ptr.vmem [resolvable:$true] %s832_s14 }
  0x8b   :  { %853 = vmatmul.msk.f32.gmra.mxu2 %vm42_vm0, %v38_v50  ;;  %855 = vmatmul.msk.f32.gmra.mxu3 %vm42_vm0, %v38_v50  ;;  %v92_v50 = vpop.f32.mrf.mxu3 }
  0x8c   :  { %932 = vset.pattern.permute.xlu1 %v969_v38  ;;  %933 = vset.pattern.permute.xlu2 %v969_v38 }
  0x8d   :  { %860 = vmatmul.msk.f32.gmra.mxu0 %vm42_vm0, %v858_v53  ;;  %862 = vmatmul.msk.f32.gmra.mxu1 %vm42_vm0, %v858_v53  ;;  %v443_v59 = vpop.permute.xlu0 %442  ;;  %v516_v60 = vpop.permute.xlu1 %515 }
  0x8e   :  { %v445_v61 = vsel %vm444_vm5, %v441_v36, %v443_v59  ;;  %v446_v62 = vsel %vm444_vm5, %v443_v59, %v441_v36  ;;  %v520_v63 = vsel %vm519_vm6, %v516_v60, %v518_v56  ;;  %v521_v0 = vsel %vm519_vm6, %v518_v56, %v516_v60  ;;  %v808_v36 = vld [vmem:[%s1168_s3] sm:$0xff]  ;;  %817 = vperm.xlu2 %933, %v809_v37  }
  0x8f   :  { %v454_v1 = vmul.f32 %v450_v54, %v445_v61  ;;  %v455_v2 = vmul.f32 %v451_v55, %v446_v62  ;;  %v529_v4 = vmul.f32 %v525_v57, %v521_v0  ;;  %v530_v5 = vmul.f32 %v526_v58, %v520_v63  ;;  %812 = vperm.xlu1 %932, %v808_v36  }
  0x90   :  { %934 = vset.pattern.permute.xlu0 %v969_v38 }
  0x91   :  { %480 = vmatpush.msrb.mxu0 %v454_v1  ;;  %503 = vmatpush.msrb.mxu1 %v455_v2 }
  0x93   :  { %866 = vmatmul.msk.f32.vlgmr.msra.gmra.mxu2 %vm42_vm0, %v864_v3  ;;  %868 = vmatmul.msk.f32.vlgmr.msra.gmra.mxu3 %vm42_vm0, %v864_v3 }
  0x94   :  { %555 = vmatpush.msra.mxu2 %v529_v4  ;;  %578 = vmatpush.msra.mxu3 %v530_v5 }
  0x95   :  { %873 = vmatmul.msk.f32.vlgmr.msra.gmra.mxu0 %vm42_vm0, %v871_v7  ;;  %875 = vmatmul.msk.f32.vlgmr.msra.gmra.mxu1 %vm42_vm0, %v871_v7  ;;  %v593_v11 = vpop.permute.xlu1 %592  ;;  %v591_v12 = vpop.permute.xlu0 %590 }
  0x96   :  { %v595_v13 = vsel %vm594_vm7, %v591_v12, %v593_v11  ;;  %v596_v14 = vsel %vm594_vm7, %v593_v11, %v591_v12 }
  0x97   :  { %v604_v15 = vmul.f32 %v600_v9, %v595_v13  ;;  %v605_v16 = vmul.f32 %v601_v10, %v596_v14  ;;  %v672_v30 = vmul.f32 %v668_v21, %v595_v13  ;;  %v673_v31 = vmul.f32 %v669_v22, %v596_v14 }
  0x99   :  { %630 = vmatpush.msra.mxu0 %v604_v15  ;;  %653 = vmatpush.msra.mxu1 %v605_v16 }
  0x9b   :  { %867 = vmatmul.msk.f32.gmra.mxu2 %vm42_vm0, %v865_v17  ;;  %869 = vmatmul.msk.f32.gmra.mxu3 %vm42_vm0, %v865_v17 }
  0x9d   :  { %874 = vmatmul.msk.f32.gmra.mxu0 %vm42_vm0, %v872_v19  ;;  %876 = vmatmul.msk.f32.gmra.mxu1 %vm42_vm0, %v872_v19  ;;  %v736_v24 = vpop.permute.xlu0 %735 }
  0x9e   :  { %v738_v27 = vsel %vm737_vm8, %v734_v23, %v736_v24  ;;  %v739_v28 = vsel %vm737_vm8, %v736_v24, %v734_v23 }
  0x9f   :  { %v747_v8 = vmul.f32 %v743_v25, %v738_v27  ;;  %v748_v33 = vmul.f32 %v744_v26, %v739_v28 }
  0xa3   :  { %880 = vmatmul.msk.f32.vlgmr.msrb.gmra.mxu2 %vm42_vm0, %v878_v29  ;;  %882 = vmatmul.msk.f32.vlgmr.msrb.gmra.mxu3 %vm42_vm0, %v878_v29 }
  0xa4   :  { %698 = vmatpush.msrb.mxu2 %v672_v30  ;;  %721 = vmatpush.msrb.mxu3 %v673_v31 }
  0xa5   :  { %887 = vmatmul.msk.f32.vlgmr.msrb.gmra.mxu0 %vm42_vm0, %v885_v32  ;;  %889 = vmatmul.msk.f32.vlgmr.msrb.gmra.mxu1 %vm42_vm0, %v885_v32 }
  0xa6   :  { %773 = vmatpush.msrb.mxu0 %v747_v8  ;;  %796 = vmatpush.msrb.mxu1 %v748_v33 }
  0xab   :  { %881 = vmatmul.msk.f32.gmra.mxu2 %vm42_vm0, %v879_v34  ;;  %883 = vmatmul.msk.f32.gmra.mxu3 %vm42_vm0, %v879_v34 }
  0xad   :  { %888 = vmatmul.msk.f32.gmra.mxu0 %vm42_vm0, %v886_v35  ;;  %890 = vmatmul.msk.f32.gmra.mxu1 %vm42_vm0, %v886_v35 }
  0xb3   :  { %894 = vmatmul.msk.f32.vlgmr.msra.gmra.mxu2 %vm42_vm0, %v892_v39  ;;  %896 = vmatmul.msk.f32.vlgmr.msra.gmra.mxu3 %vm42_vm0, %v892_v39 }
  0xb5   :  { %901 = vmatmul.msk.f32.vlgmr.msra.gmra.mxu0 %vm42_vm0, %v899_v40  ;;  %903 = vmatmul.msk.f32.vlgmr.msra.gmra.mxu1 %vm42_vm0, %v899_v40 }
  0xbb   :  { %895 = vmatmul.msk.f32.gmra.mxu2 %vm42_vm0, %v893_v41  ;;  %897 = vmatmul.msk.f32.gmra.mxu3 %vm42_vm0, %v893_v41 }
  0xbd   :  { %902 = vmatmul.msk.f32.gmra.mxu0 %vm42_vm0, %v900_v42  ;;  %904 = vmatmul.msk.f32.gmra.mxu1 %vm42_vm0, %v900_v42 }
  0xc3   :  { %908 = vmatmul.msk.f32.vlgmr.msrb.gmra.mxu2 %vm42_vm0, %v906_v43  ;;  %910 = vmatmul.msk.f32.vlgmr.msrb.gmra.mxu3 %vm42_vm0, %v906_v43 }
  0xc5   :  { %915 = vmatmul.msk.f32.vlgmr.msrb.gmra.mxu0 %vm42_vm0, %v913_v44  ;;  %917 = vmatmul.msk.f32.vlgmr.msrb.gmra.mxu1 %vm42_vm0, %v913_v44 }
  0xcb   :  { %909 = vmatmul.msk.f32.gmra.mxu2 %vm42_vm0, %v907_v45  ;;  %911 = vmatmul.msk.f32.gmra.mxu3 %vm42_vm0, %v907_v45 }
  0xcd   :  { %916 = vmatmul.msk.f32.gmra.mxu0 %vm42_vm0, %v914_v46  ;;  %918 = vmatmul.msk.f32.gmra.mxu1 %vm42_vm0, %v914_v46 }
 0x102   :  { %v189_v51 = vpop.f32.mrf.mxu0  ;;  %v212_v52 = vpop.f32.mrf.mxu1 }
 0x106   :  { %v118_v53 = vpop.f32.mrf.mxu2  ;;  %v141_v54 = vpop.f32.mrf.mxu3 }
 0x107   :  { %v119_v12 = vadd.f32 %v118_v53, %v66_v47  ;;  %v142_v13 = vadd.f32 %v141_v54, %v89_v48  ;;  %v813_v53 = vpop.permute.xlu1 %812 }
 0x109   :  { %v218_v16 = vadd.f32 %v189_v51, %v119_v12  ;;  %v219_v17 = vadd.f32 %v212_v52, %v142_v13 }
 0x10a   :  { %v192_v55 = vpop.f32.mrf.mxu0  ;;  %v215_v56 = vpop.f32.mrf.mxu1 }
 0x10e   :  { %v121_v57 = vpop.f32.mrf.mxu2  ;;  %v144_v58 = vpop.f32.mrf.mxu3 }
 0x10f   :  { %v122_v22 = vadd.f32 %v121_v57, %v69_v49  ;;  %v145_v23 = vadd.f32 %v144_v58, %v92_v50 }
 0x111   :  { %v220_v28 = vadd.f32 %v192_v55, %v122_v22  ;;  %v221_v29 = vadd.f32 %v215_v56, %v145_v23 }
 0x112   :  { %v339_v59 = vpop.f32.mrf.mxu0  ;;  %v362_v60 = vpop.f32.mrf.mxu1 }
 0x116   :  { %v264_v61 = vpop.f32.mrf.mxu2  ;;  %v287_v62 = vpop.f32.mrf.mxu3 }
 0x117   :  { %v293_v18 = vadd.f32 %v264_v61, %v218_v16  ;;  %v294_v19 = vadd.f32 %v287_v62, %v219_v17 }
 0x119   :  { %v368_v24 = vadd.f32 %v339_v59, %v293_v18  ;;  %v369_v25 = vadd.f32 %v362_v60, %v294_v19 }
 0x11a   :  { %v342_v63 = vpop.f32.mrf.mxu0  ;;  %v365_v0 = vpop.f32.mrf.mxu1 }
 0x11e   :  { %v267_v1 = vpop.f32.mrf.mxu2  ;;  %v290_v2 = vpop.f32.mrf.mxu3 }
 0x11f   :  { %v295_v32 = vadd.f32 %v267_v1, %v220_v28  ;;  %v296_v8 = vadd.f32 %v290_v2, %v221_v29 }
 0x121   :  { %v370_v37 = vadd.f32 %v342_v63, %v295_v32  ;;  %v371_v38 = vadd.f32 %v365_v0, %v296_v8 }
 0x122   :  { %v482_v3 = vpop.f32.mrf.mxu0  ;;  %v505_v4 = vpop.f32.mrf.mxu1 }
 0x126   :  { %v407_v5 = vpop.f32.mrf.mxu2  ;;  %v430_v6 = vpop.f32.mrf.mxu3 }
 0x127   :  { %v436_v30 = vadd.f32 %v407_v5, %v368_v24  ;;  %v437_v31 = vadd.f32 %v430_v6, %v369_v25 }
 0x129   :  { %v511_v35 = vadd.f32 %v482_v3, %v436_v30  ;;  %v512_v36 = vadd.f32 %v505_v4, %v437_v31  ;;  %v818_v4 = vpop.permute.xlu2 %817 }
 0x12a   :  { %v485_v7 = vpop.f32.mrf.mxu0  ;;  %v508_v9 = vpop.f32.mrf.mxu1 }
 0x12e   :  { %v410_v10 = vpop.f32.mrf.mxu2  ;;  %v433_v11 = vpop.f32.mrf.mxu3 }
 0x12f   :  { %v438_v41 = vadd.f32 %v410_v10, %v370_v37  ;;  %v439_v42 = vadd.f32 %v433_v11, %v371_v38 }
 0x131   :  { %v513_v49 = vadd.f32 %v485_v7, %v438_v41  ;;  %v514_v50 = vadd.f32 %v508_v9, %v439_v42 }
 0x132   :  { %v632_v14 = vpop.f32.mrf.mxu0  ;;  %v655_v15 = vpop.f32.mrf.mxu1 }
 0x136   :  { %v557_v20 = vpop.f32.mrf.mxu2  ;;  %v580_v21 = vpop.f32.mrf.mxu3 }
 0x137   :  { %v586_v39 = vadd.f32 %v557_v20, %v511_v35  ;;  %v587_v40 = vadd.f32 %v580_v21, %v512_v36 }
 0x139   :  { %v661_v45 = vadd.f32 %v632_v14, %v586_v39  ;;  %v662_v46 = vadd.f32 %v655_v15, %v587_v40 }
 0x13a   :  { %v635_v26 = vpop.f32.mrf.mxu0  ;;  %v658_v27 = vpop.f32.mrf.mxu1 }
 0x13e   :  { %v560_v33 = vpop.f32.mrf.mxu2  ;;  %v583_v34 = vpop.f32.mrf.mxu3 }
 0x13f   :  { %v588_v54 = vadd.f32 %v560_v33, %v513_v49  ;;  %v589_v55 = vadd.f32 %v583_v34, %v514_v50 }
 0x141   :  { %v663_v60 = vadd.f32 %v635_v26, %v588_v54  ;;  %v664_v61 = vadd.f32 %v658_v27, %v589_v55 }
 0x142   :  { %v775_v43 = vpop.f32.mrf.mxu0  ;;  %v798_v44 = vpop.f32.mrf.mxu1 }
 0x146   :  { %v700_v47 = vpop.f32.mrf.mxu2  ;;  %v723_v48 = vpop.f32.mrf.mxu3 }
 0x147   :  { %v729_v51 = vadd.f32 %v700_v47, %v661_v45  ;;  %v730_v52 = vadd.f32 %v723_v48, %v662_v46 }
 0x149   :  { %v804_v56 = vadd.f32 %v775_v43, %v729_v51  ;;  %v805_v57 = vadd.f32 %v798_v44, %v730_v52 }
 0x14a   :  { %v778_v62 = vpop.f32.mrf.mxu0  ;;  %v801_v63 = vpop.f32.mrf.mxu1 }
 0x14b   :  { %v820_v58 = vadd.f32 %v813_v53, %v804_v56  ;;  %v821_v59 = vadd.f32 %v813_v53, %v805_v57 }
 0x14d   :  { %824 = vst [vmem:[#allocation2] sm:$0xff] %v820_v58 }
 0x14e   :  { %825 = vst [vmem:[#allocation2 + $0x8] sm:$0xff] %v821_v59  ;;  %v703_v0 = vpop.f32.mrf.mxu2  ;;  %v726_v1 = vpop.f32.mrf.mxu3 }
 0x14f   :  { %v731_v2 = vadd.f32 %v703_v0, %v663_v60  ;;  %v732_v3 = vadd.f32 %v726_v1, %v664_v61 }
 0x151   :  { %v806_v5 = vadd.f32 %v778_v62, %v731_v2  ;;  %v807_v6 = vadd.f32 %v801_v63, %v732_v3 }
 0x153   :  { %v822_v7 = vadd.f32 %v818_v4, %v806_v5  ;;  %v823_v9 = vadd.f32 %v818_v4, %v807_v6 }
 0x155   :  { %826 = vst [vmem:[#allocation2 + $0x10] sm:$0xff] %v822_v7 }
 0x156   :  { %827 = vst [vmem:[#allocation2 + $0x18] sm:$0xff] %v823_v9 }
 0x157   :  { %840 = dma.vmem_to_hbm [thread:$0]  %s833_s14, 512, %s835_s16, [#allocation3], %s971_s17, %s971_s17, %s962_s18  }
 0x158   :  { %959 = dma.done.wait [#allocation3], 512  }
 0x159   :  { %960 = vsyncadd [#allocation3], 4294966784 }
 0x15a   :  { %845 = vsyncpa [#allocation3], 1 }

</bundles_post_ra>
